<compile_context>
chip_gen: v6e
topology: v6e:2x2x1
jax: 0.10.0
libtpu: 0.0.40
codegen_flags: <defaults>
</compile_context>

<pallas_src>
import functools

import jax
import jax.numpy as jnp
from jax.experimental import pallas as pl
from jax.experimental.pallas import tpu as pltpu

_OUT_PAD = 128  # lane-dense padded width of the final layer


def _round_up(x, m):
    return ((x + m - 1) // m) * m


def _mlp_kernel(x_ref, w1_ref, b1_ref, w2_ref, b2_ref, w3_ref, b3_ref, o_ref):
    # Layer 1: (TB, D) @ (D, 64) -> f32 accumulate, f32 bias + ReLU.
    h1 = jnp.dot(x_ref[...], w1_ref[...], preferred_element_type=jnp.float32)
    h1 = jnp.maximum(h1 + b1_ref[...], 0.0)
    # Layer 2: (TB, 64) @ (64, 32) -> f32 accumulate, f32 bias + ReLU.
    h2 = jnp.dot(h1.astype(w2_ref.dtype), w2_ref[...],
                 preferred_element_type=jnp.float32)
    h2 = jnp.maximum(h2 + b2_ref[...], 0.0)
    # Layer 3 (lane-dense padded): (TB, 32) @ (32, 128) + (1, 128).
    out = jnp.dot(h2.astype(w3_ref.dtype), w3_ref[...],
                  preferred_element_type=jnp.float32)
    o_ref[...] = (out + b3_ref[...]).astype(o_ref.dtype)


@functools.partial(jax.jit, static_argnames=("block_batch", "use_bf16"))
def financial_health_nn(x, params, *, block_batch=512, use_bf16=False):
    """Forward pass of FinancialHealthNN as a single batch-tiled Pallas kernel.

    x: (batch, input_size) float32
    params: dict with w1 (D,64), b1 (1,64), w2 (64,32), b2 (1,32),
            w3 (32,3), b3 (1,3)
    returns: (batch, 3) float32
    """
    w1, b1 = params["w1"], params["b1"]
    w2, b2 = params["w2"], params["b2"]
    w3, b3 = params["w3"], params["b3"]

    batch, d_in = x.shape

    # Lane-dense final layer: pad 3 output columns -> 128.
    w3p = jnp.zeros((w3.shape[0], _OUT_PAD), jnp.float32).at[:, :3].set(w3)
    b3p = jnp.zeros((1, _OUT_PAD), jnp.float32).at[:, :3].set(b3)

    # Batch tile: multiple of 8 (sublane), capped by requested block_batch.
    tb = min(_round_up(block_batch, 8), _round_up(batch, 8))
    batch_p = _round_up(batch, tb)
    if batch_p != batch:
        x = jnp.pad(x, ((0, batch_p - batch), (0, 0)))

    # Optional bf16 streaming of x / weights (MXU operands only).
    if use_bf16:
        xd = x.astype(jnp.bfloat16)
        w1d, w2d, w3d = (w1.astype(jnp.bfloat16), w2.astype(jnp.bfloat16),
                         w3p.astype(jnp.bfloat16))
    else:
        xd, w1d, w2d, w3d = x, w1, w2, w3p

    grid = (batch_p // tb,)
    const = lambda a: pl.BlockSpec(a.shape, lambda i: (0,) * a.ndim)

    x_bytes = batch_p * d_in * xd.dtype.itemsize
    w_bytes = (w1d.size * w1d.dtype.itemsize + w2d.size * w2d.dtype.itemsize
               + w3d.size * w3d.dtype.itemsize
               + (b1.size + b2.size + b3p.size) * 4)
    out_bytes = batch_p * _OUT_PAD * 4
    flops = 2 * batch_p * (d_in * 64 + 64 * 32 + 32 * _OUT_PAD)

    out_padded = pl.pallas_call(
        _mlp_kernel,
        out_shape=jax.ShapeDtypeStruct((batch_p, _OUT_PAD), jnp.float32),
        grid=grid,
        in_specs=[
            pl.BlockSpec((tb, d_in), lambda i: (i, 0)),   # x: tiled over batch
            const(w1d), const(b1),                        # weights/biases resident
            const(w2d), const(b2),
            const(w3d), const(b3p),
        ],
        out_specs=pl.BlockSpec((tb, _OUT_PAD), lambda i: (i, 0)),
        compiler_params=pltpu.CompilerParams(
            dimension_semantics=("parallel",)),
        cost_estimate=pl.CostEstimate(
            flops=flops, transcendentals=0,
            bytes_accessed=x_bytes + w_bytes + out_bytes),
    )(xd, w1d, b1, w2d, b2, w3d, b3p)

    # Slice back to the true (batch, 3) output.
    return out_padded[:batch, :3]


def init_params(key, input_size):
    """Deterministic init matching PyTorch nn.Linear (uniform +/- 1/sqrt(fan_in))."""
    def linear(k, fan_in, fan_out):
        kw, kb = jax.random.split(k)
        bound = 1.0 / jnp.sqrt(fan_in)
        # Stored as (in, out) for y = x @ W + b.
        w = jax.random.uniform(kw, (fan_in, fan_out), jnp.float32, -bound, bound)
        b = jax.random.uniform(kb, (1, fan_out), jnp.float32, -bound, bound)
        return w, b

    k1, k2, k3 = jax.random.split(key, 3)
    w1, b1 = linear(k1, input_size, 64)
    w2, b2 = linear(k2, 64, 32)
    w3, b3 = linear(k3, 32, 3)
    return {"w1": w1, "b1": b1, "w2": w2, "b2": b2, "w3": w3, "b3": b3}


def reference_forward(x, params):
    h1 = jnp.maximum(x @ params["w1"] + params["b1"], 0.0)
    h2 = jnp.maximum(h1 @ params["w2"] + params["b2"], 0.0)
    return h2 @ params["w3"] + params["b3"]


if __name__ == "__main__":
    key = jax.random.PRNGKey(0)
    k_param, k_x = jax.random.split(key)

    batch, input_size = 8, 16
    params = init_params(k_param, input_size)
    x = jax.random.normal(k_x, (batch, input_size), jnp.float32)

    # Small-batch f32 path: exact check vs pure-JAX reference.
    out = jax.block_until_ready(financial_health_nn(x, params))
    ref = reference_forward(x, params)
    assert out.shape == (batch, 3)
    assert jnp.allclose(out, ref, atol=1e-5, rtol=1e-5), "mismatch vs pure-JAX reference"

    # Larger batch exercising the tiled grid (padding path) + bf16 streaming.
    x_big = jax.random.normal(jax.random.PRNGKey(1), (1000, input_size), jnp.float32)
    out_big = jax.block_until_ready(
        financial_health_nn(x_big, params, block_batch=512, use_bf16=True))
    ref_big = reference_forward(x_big, params)
    assert out_big.shape == (1000, 3)
    assert jnp.allclose(out_big, ref_big, atol=0.1, rtol=0.1), "bf16 path mismatch"

    print("KERNEL_OK")
</pallas_src>

<mosaic_0001>
module attributes {stable_mosaic.version = 11 : i64} {
  func.func @_mlp_kernel(%arg0: i32, %arg1: memref<8x16xf32, #tpu.memory_space<vmem>>, %arg2: memref<16x64xf32, #tpu.memory_space<vmem>>, %arg3: memref<1x64xf32, #tpu.memory_space<vmem>>, %arg4: memref<64x32xf32, #tpu.memory_space<vmem>>, %arg5: memref<1x32xf32, #tpu.memory_space<vmem>>, %arg6: memref<32x128xf32, #tpu.memory_space<vmem>>, %arg7: memref<1x128xf32, #tpu.memory_space<vmem>>, %arg8: memref<8x128xf32, #tpu.memory_space<vmem>>) attributes {dimension_semantics = [#tpu.dimension_semantics<parallel>], iteration_bounds = array<i64: 1>, scalar_prefetch = 0 : i64, scratch_operands = 0 : i64, tpu.core_type = #tpu.core_type<tc>, window_params = [{transform_indices = @transform_0, window_bounds = array<i64: 8, 16>}, {pipeline_mode = #tpu.pipeline_mode<synchronous>, transform_indices = @transform_1, window_bounds = array<i64: 16, 64>}, {pipeline_mode = #tpu.pipeline_mode<synchronous>, transform_indices = @transform_2, window_bounds = array<i64: 1, 64>}, {pipeline_mode = #tpu.pipeline_mode<synchronous>, transform_indices = @transform_3, window_bounds = array<i64: 64, 32>}, {pipeline_mode = #tpu.pipeline_mode<synchronous>, transform_indices = @transform_4, window_bounds = array<i64: 1, 32>}, {pipeline_mode = #tpu.pipeline_mode<synchronous>, transform_indices = @transform_5, window_bounds = array<i64: 32, 128>}, {pipeline_mode = #tpu.pipeline_mode<synchronous>, transform_indices = @transform_6, window_bounds = array<i64: 1, 128>}, {transform_indices = @transform_7, window_bounds = array<i64: 8, 128>}]} {
    %c0 = arith.constant 0 : index
    %c0_0 = arith.constant 0 : index
    %0 = vector.load %arg1[%c0, %c0_0] : memref<8x16xf32, #tpu.memory_space<vmem>>, vector<8x16xf32>
    %c0_1 = arith.constant 0 : index
    %c0_2 = arith.constant 0 : index
    %1 = vector.load %arg2[%c0_1, %c0_2] : memref<16x64xf32, #tpu.memory_space<vmem>>, vector<16x64xf32>
    %cst = arith.constant dense<0.000000e+00> : vector<8x64xf32>
    %2 = tpu.matmul %0, %1, %cst {dimension_numbers = #tpu.dot_dimension_numbers<[1], [0], [0], [1], [0, 0, 1, 1], [], []>} : vector<8x16xf32>, vector<16x64xf32>, vector<8x64xf32> -> vector<8x64xf32>
    %c0_3 = arith.constant 0 : index
    %c0_4 = arith.constant 0 : index
    %3 = vector.load %arg3[%c0_3, %c0_4] : memref<1x64xf32, #tpu.memory_space<vmem>>, vector<1x64xf32>
    %4 = vector.broadcast %3 : vector<1x64xf32> to vector<8x64xf32>
    %5 = arith.addf %2, %4 : vector<8x64xf32>
    %cst_5 = arith.constant 0.000000e+00 : f32
    %6 = vector.broadcast %cst_5 : f32 to vector<8x64xf32>
    %7 = arith.maximumf %5, %6 : vector<8x64xf32>
    %c0_6 = arith.constant 0 : index
    %c0_7 = arith.constant 0 : index
    %8 = vector.load %arg4[%c0_6, %c0_7] : memref<64x32xf32, #tpu.memory_space<vmem>>, vector<64x32xf32>
    %cst_8 = arith.constant dense<0.000000e+00> : vector<8x32xf32>
    %9 = tpu.matmul %7, %8, %cst_8 {dimension_numbers = #tpu.dot_dimension_numbers<[1], [0], [0], [1], [0, 0, 1, 1], [], []>} : vector<8x64xf32>, vector<64x32xf32>, vector<8x32xf32> -> vector<8x32xf32>
    %c0_9 = arith.constant 0 : index
    %c0_10 = arith.constant 0 : index
    %10 = vector.load %arg5[%c0_9, %c0_10] : memref<1x32xf32, #tpu.memory_space<vmem>>, vector<1x32xf32>
    %11 = vector.broadcast %10 : vector<1x32xf32> to vector<8x32xf32>
    %12 = arith.addf %9, %11 : vector<8x32xf32>
    %cst_11 = arith.constant 0.000000e+00 : f32
    %13 = vector.broadcast %cst_11 : f32 to vector<8x32xf32>
    %14 = arith.maximumf %12, %13 : vector<8x32xf32>
    %c0_12 = arith.constant 0 : index
    %c0_13 = arith.constant 0 : index
    %15 = vector.load %arg6[%c0_12, %c0_13] : memref<32x128xf32, #tpu.memory_space<vmem>>, vector<32x128xf32>
    %cst_14 = arith.constant dense<0.000000e+00> : vector<8x128xf32>
    %16 = tpu.matmul %14, %15, %cst_14 {dimension_numbers = #tpu.dot_dimension_numbers<[1], [0], [0], [1], [0, 0, 1, 1], [], []>} : vector<8x32xf32>, vector<32x128xf32>, vector<8x128xf32> -> vector<8x128xf32>
    %c0_15 = arith.constant 0 : index
    %c0_16 = arith.constant 0 : index
    %17 = vector.load %arg7[%c0_15, %c0_16] : memref<1x128xf32, #tpu.memory_space<vmem>>, vector<1x128xf32>
    %18 = vector.broadcast %17 : vector<1x128xf32> to vector<8x128xf32>
    %19 = arith.addf %16, %18 : vector<8x128xf32>
    %c0_17 = arith.constant 0 : index
    %c0_18 = arith.constant 0 : index
    %20 = vector.load %arg8[%c0_17, %c0_18] : memref<8x128xf32, #tpu.memory_space<vmem>>, vector<8x128xf32>
    tpu.vector_store %arg8[%c0_17, %c0_18], %19 {strides = array<i32>} : memref<8x128xf32, #tpu.memory_space<vmem>>, vector<8x128xf32>,
    return
  }
  func.func @transform_0(%arg0: i32) -> (i32, i32) {
    %c0_i32 = arith.constant 0 : i32
    %c0_i32_0 = arith.constant 0 : i32
    return %arg0, %c0_i32 : i32, i32
  }
  func.func @transform_1(%arg0: i32) -> (i32, i32) {
    %c0_i32 = arith.constant 0 : i32
    %c0_i32_0 = arith.constant 0 : i32
    %c0_i32_1 = arith.constant 0 : i32
    return %c0_i32, %c0_i32_0 : i32, i32
  }
  func.func @transform_2(%arg0: i32) -> (i32, i32) {
    %c0_i32 = arith.constant 0 : i32
    %c0_i32_0 = arith.constant 0 : i32
    %c0_i32_1 = arith.constant 0 : i32
    return %c0_i32, %c0_i32_0 : i32, i32
  }
  func.func @transform_3(%arg0: i32) -> (i32, i32) {
    %c0_i32 = arith.constant 0 : i32
    %c0_i32_0 = arith.constant 0 : i32
    %c0_i32_1 = arith.constant 0 : i32
    return %c0_i32, %c0_i32_0 : i32, i32
  }
  func.func @transform_4(%arg0: i32) -> (i32, i32) {
    %c0_i32 = arith.constant 0 : i32
    %c0_i32_0 = arith.constant 0 : i32
    %c0_i32_1 = arith.constant 0 : i32
    return %c0_i32, %c0_i32_0 : i32, i32
  }
  func.func @transform_5(%arg0: i32) -> (i32, i32) {
    %c0_i32 = arith.constant 0 : i32
    %c0_i32_0 = arith.constant 0 : i32
    %c0_i32_1 = arith.constant 0 : i32
    return %c0_i32, %c0_i32_0 : i32, i32
  }
  func.func @transform_6(%arg0: i32) -> (i32, i32) {
    %c0_i32 = arith.constant 0 : i32
    %c0_i32_0 = arith.constant 0 : i32
    %c0_i32_1 = arith.constant 0 : i32
    return %c0_i32, %c0_i32_0 : i32, i32
  }
  func.func @transform_7(%arg0: i32) -> (i32, i32) {
    %c0_i32 = arith.constant 0 : i32
    %c0_i32_0 = arith.constant 0 : i32
    return %arg0, %c0_i32 : i32, i32
  }
}

</mosaic_0001>

<bundles_post_ra>
// kernel: financial_health_nn.1
= control target key start
LH: loop header
LB: loop body
LE: loop exit
PB: predicated region body
PF: predicated region fallthrough
CT: control target
= control target key end

     0   :  { %v353_v0 = vmov 0.0   ;;  %vm354_vm0 = vmmov 0   ;;  %vm36_vm1 = vcmask 130048   ;;  %vm126_vm2 = vcmask 523264   ;;  %s455_s1 = inlined_call_operand.vmem [shape: f32[16,64], index: 1, kind: input, shape index: {}]   ;;  %s456_s0 = inlined_call_operand.vmem [shape: f32[8,16], index: 0, kind: input, shape index: {}]   ;;  %s457_s3 = inlined_call_operand.vmem [shape: f32[64,32], index: 3, kind: input, shape index: {}]   ;;  %s458_s5 = inlined_call_operand.vmem [shape: f32[32,128], index: 5, kind: input, shape index: {}]   ;;  %s459_s2 = inlined_call_operand.vmem [shape: f32[1,64], index: 2, kind: input, shape index: {}]   ;;  %s460_s4 = inlined_call_operand.vmem [shape: f32[1,32], index: 4, kind: input, shape index: {}]   ;;  %s461_s6 = inlined_call_operand.vmem [shape: f32[1,128], index: 6, kind: input, shape index: {}]   ;;  %s462_s7 = inlined_call_operand.vmem [shape: f32[8,128], index: 7, kind: output, shape index: {}]  }
   0x1   :  { %314 = vmatprep.subr.mxu0 %v353_v0  ;;  %v28_v1 = vld [vmem:[%s455_s1 + $0x8] sm:$0xff]  ;;  %v27_v2 = vld [vmem:[%s455_s1] sm:$0xff]  ;;  %318 = vmatprep.mubr.msk.f32.mxu0 %vm354_vm0, %v353_v0  ;;  %v118_v4 = vld [vmem:[%s457_s3 + $0x38] sm:$0xff]  ;;  %vm212_vm3 = vcmask 261120  }
   0x2   :  { %315 = vmatpush3.msra.mxu0 %v28_v1  ;;  %v26_v3 = vld [vmem:[%s456_s0] sm:$0xff]  ;;  %321 = vmatprep.subr.mxu1 %v353_v0  ;;  %v117_v5 = vld [vmem:[%s457_s3 + $0x30] sm:$0xff]  ;;  %v116_v6 = vld [vmem:[%s457_s3 + $0x28] sm:$0xff] }
   0x3   :  { %316 = vmatprep.subr.mxu0 %v353_v0  ;;  %322 = vmatpush3.msra.mxu1 %v118_v4  ;;  %v115_v7 = vld [vmem:[%s457_s3 + $0x20] sm:$0xff]  ;;  %v114_v8 = vld [vmem:[%s457_s3 + $0x18] sm:$0xff]  ;;  %v113_v9 = vld [vmem:[%s457_s3 + $0x10] sm:$0xff] }
   0x4   :  { %317 = vmatpush3.msra.mxu0 %v27_v2  ;;  %323 = vmatprep.subr.mxu1 %v353_v0  ;;  %v112_v10 = vld [vmem:[%s457_s3 + $0x8] sm:$0xff]  ;;  %v111_v11 = vld [vmem:[%s457_s3] sm:$0xff]  ;;  %v204_v12 = vld [vmem:[%s458_s5 + $0x18] sm:$0xff] }
   0x5   :  { %319 = vmatmul.mubr.msk.f32.vlgmr.msra.gmra.mxu0 %vm36_vm1, %v26_v3  ;;  %324 = vmatpush3.msra.mxu1 %v117_v5  ;;  %v291_v13 = vld [vmem:[%s459_s2] ss:$0 sm:$0xff]  ;;  %v203_v18 = vld [vmem:[%s458_s5 + $0x10] sm:$0xff]  ;;  %v202_v19 = vld [vmem:[%s458_s5 + $0x8] sm:$0xff] }
   0x6   :  { %325 = vmatprep.subr.mxu1 %v353_v0  ;;  %337 = vmatprep.mubr.msk.f32.mxu1 %vm354_vm0, %v353_v0  ;;  %v201_v20 = vld [vmem:[%s458_s5] sm:$0xff] }
   0x7   :  { %326 = vmatpush3.msra.mxu1 %v116_v6  ;;  %340 = vmatprep.subr.mxu0 %v353_v0  ;;  %v293_v21 = vld [vmem:[%s460_s4] ss:$0 sm:$0xff] }
   0x8   :  { %327 = vmatprep.subr.mxu1 %v353_v0  ;;  %348 = vmatprep.mubr.msk.f32.mxu0 %vm354_vm0, %v353_v0  ;;  %v295_v26 = vld [vmem:[%s461_s6] ss:$0 sm:$0xff] }
   0x9   :  { %328 = vmatpush3.msra.mxu1 %v115_v7  ;;  %341 = vmatpush3.msra.mxu0 %v204_v12 }
   0xa   :  { %329 = vmatprep.subr.mxu1 %v353_v0  ;;  %342 = vmatprep.subr.mxu0 %v353_v0 }
   0xb   :  { %330 = vmatpush3.msra.mxu1 %v114_v8  ;;  %343 = vmatpush3.msra.mxu0 %v203_v18 }
   0xc   :  { %331 = vmatprep.subr.mxu1 %v353_v0  ;;  %344 = vmatprep.subr.mxu0 %v353_v0 }
   0xd   :  { %332 = vmatpush3.msra.mxu1 %v113_v9  ;;  %345 = vmatpush3.msra.mxu0 %v202_v19 }
   0xe   :  { %333 = vmatprep.subr.mxu1 %v353_v0  ;;  %346 = vmatprep.subr.mxu0 %v353_v0 }
   0xf   :  { %334 = vmatpush3.msra.mxu1 %v112_v10  ;;  %347 = vmatpush3.msra.mxu0 %v201_v20 }
  0x10   :  { %335 = vmatprep.subr.mxu1 %v353_v0 }
  0x11   :  { %336 = vmatpush3.msra.mxu1 %v111_v11 }
  0xc5   :  { %v106_v14 = vpop.f32.mrf.mxu0 }
  0xc6   :  { %v107_v15 = vadd.f32 %v291_v13, %v106_v14 }
  0xc7   :  { %v320_v16 = vpop.f32.mrf.mxu0 }
  0xc8   :  { %v110_v17 = vmax.f32 %v107_v15, 0.0 }
  0xca   :  { %338 = vmatmul.mubr.msk.f32.vlgmr.msra.gmra.mxu1 %vm126_vm2, %v110_v17 }
 0x18a   :  { %v196_v22 = vpop.f32.mrf.mxu1 }
 0x18b   :  { %v197_v23 = vadd.f32 %v293_v21, %v196_v22 }
 0x18c   :  { %v339_v24 = vpop.f32.mrf.mxu1 }
 0x18d   :  { %v200_v25 = vmax.f32 %v197_v23, 0.0 }
 0x18f   :  { %349 = vmatmul.mubr.msk.f32.vlgmr.msra.gmra.mxu0 %vm212_vm3, %v200_v25 }
 0x24f   :  { %v282_v27 = vpop.f32.mrf.mxu0 }
 0x250   :  { %v283_v28 = vadd.f32 %v295_v26, %v282_v27 }
 0x251   :  { %v350_v29 = vpop.f32.mrf.mxu0 }
 0x252   :  { %286 = vst [vmem:[%s462_s7] sm:$0xff] %v283_v28 }

</bundles_post_ra>
